<compile_context>
chip_gen: v7x
topology: tpu7x:2x2x1
jax: 0.10.0
libtpu: 0.0.40
codegen_flags: <defaults>
</compile_context>

<pallas_src>
import math

import jax
import jax.numpy as jnp
from jax.experimental import pallas as pl
from jax.experimental.pallas import tpu as pltpu


def _gene_embed_kernel(x_ref, w_ref, b_ref, o_ref):
    # x_ref: (tm, 1)   -- gene values for this row tile
    # w_ref: (1, te)   -- Linear weight slice (transposed row vector)
    # b_ref: (1, te)   -- Linear bias slice
    # o_ref: (tm, te)
    x = x_ref[...].astype(jnp.float32)
    w = w_ref[...].astype(jnp.float32)
    b = b_ref[...].astype(jnp.float32)
    o_ref[...] = (x * w + b).astype(o_ref.dtype)   # broadcast on the VPU


def _round_up(x, m):
    return ((x + m - 1) // m) * m


def gene_embedding_forward(gene_values, weight, bias, *,
                           tm=1024, te=512, out_dtype=None,
                           vmem_budget_bytes=12 * 1024 * 1024):
    """gene_values: (..., G) float
       weight:      (E, 1)  float   (PyTorch nn.Linear(1, E).weight shape)
       bias:        (E,)    float
       returns:     (..., G, E) in out_dtype (default: gene_values.dtype)
    """
    orig_shape = gene_values.shape
    E = weight.shape[0]
    out_dtype = jnp.dtype(out_dtype) if out_dtype is not None else gene_values.dtype
    out_itemsize = jnp.dtype(out_dtype).itemsize

    # Flatten every leading dim together with G into one row axis.
    N = math.prod(orig_shape) if orig_shape else 1

    # Lane-dense embedding axis: pad E to a multiple of 128.
    E_pad = _round_up(max(E, 1), 128)
    te_eff = _round_up(min(te, E_pad), 128)
    if E_pad % te_eff != 0:
        te_eff = E_pad

    # Row tile: large (HBM-write bound), but clamped to the VMEM budget
    # (2x output tile double-buffer + 2x lane-padded (tm,1) input buffer).
    tm_eff = _round_up(min(tm, _round_up(N, 8)), 8)

    def vmem_estimate(tm_rows):
        out_bufs = 2 * tm_rows * te_eff * out_itemsize
        x_bufs = 2 * tm_rows * 128 * 4          # (tm,1) f32 is lane-padded 128x
        wb_bufs = 4 * te_eff * 4
        return out_bufs + x_bufs + wb_bufs

    while vmem_estimate(tm_eff) > vmem_budget_bytes and tm_eff > 256:
        tm_eff = _round_up(tm_eff // 2, 8)

    N_pad = _round_up(N, tm_eff)

    # Prepare operands (pad rather than assert divisibility).
    x2d = gene_values.reshape(N, 1).astype(jnp.float32)
    if N_pad != N:
        x2d = jnp.pad(x2d, ((0, N_pad - N), (0, 0)))
    w_row = weight.reshape(1, E).astype(jnp.float32)
    b_row = bias.reshape(1, E).astype(jnp.float32)
    if E_pad != E:
        w_row = jnp.pad(w_row, ((0, 0), (0, E_pad - E)))
        b_row = jnp.pad(b_row, ((0, 0), (0, E_pad - E)))

    grid = (N_pad // tm_eff, E_pad // te_eff)

    cost = pl.CostEstimate(
        flops=2 * N * E,
        transcendentals=0,
        bytes_accessed=N * E * out_itemsize + N * 4 + 2 * E * 4,
    )

    out = pl.pallas_call(
        _gene_embed_kernel,
        out_shape=jax.ShapeDtypeStruct((N_pad, E_pad), out_dtype),
        grid_spec=pltpu.PrefetchScalarGridSpec(
            num_scalar_prefetch=0,
            grid=grid,
            in_specs=[
                pl.BlockSpec((tm_eff, 1), lambda i, j: (i, 0)),   # gene values
                pl.BlockSpec((1, te_eff), lambda i, j: (0, j)),   # weight row
                pl.BlockSpec((1, te_eff), lambda i, j: (0, j)),   # bias row
            ],
            out_specs=pl.BlockSpec((tm_eff, te_eff), lambda i, j: (i, j)),
        ),
        compiler_params=pltpu.CompilerParams(
            dimension_semantics=("parallel", "parallel"),
        ),
        cost_estimate=cost,
    )(x2d, w_row, b_row)

    out = out[:N, :E]
    return out.reshape(*orig_shape, E)


if __name__ == "__main__":
    key = jax.random.PRNGKey(0)
    k_x, k_w, k_b, k_x2 = jax.random.split(key, 4)

    # --- Test 1: small, friendly shapes (B=2, G=32, E=128) ---
    B, G, E = 2, 32, 128
    gene_values = jax.random.normal(k_x, (B, G), dtype=jnp.float32)
    # Deterministic "init" of nn.Linear(1, E): U(-1, 1) since fan_in = 1.
    weight = jax.random.uniform(k_w, (E, 1), minval=-1.0, maxval=1.0,
                                dtype=jnp.float32)
    bias = jax.random.uniform(k_b, (E,), minval=-1.0, maxval=1.0,
                              dtype=jnp.float32)

    out = gene_embedding_forward(gene_values, weight, bias)
    out = jax.block_until_ready(out)
    ref = gene_values[..., None] * weight.reshape(1, 1, E) + bias.reshape(1, 1, E)
    assert out.shape == (B, G, E)
    assert jnp.allclose(out, ref, atol=1e-6, rtol=1e-6)

    # --- Test 2: awkward shapes exercising row/lane padding (B=3, G=25, E=96) ---
    B2, G2, E2 = 3, 25, 96
    gv2 = jax.random.normal(k_x2, (B2, G2), dtype=jnp.float32)
    w2 = weight[:E2]
    b2 = bias[:E2]
    out2 = gene_embedding_forward(gv2, w2, b2)
    out2 = jax.block_until_ready(out2)
    ref2 = gv2[..., None] * w2.reshape(1, 1, E2) + b2.reshape(1, 1, E2)
    assert out2.shape == (B2, G2, E2)
    assert jnp.allclose(out2, ref2, atol=1e-6, rtol=1e-6)

    print("KERNEL_OK")
</pallas_src>

<mosaic_0001>
module attributes {stable_mosaic.version = 11 : i64} {
  func.func @_gene_embed_kernel(%arg0: i32, %arg1: i32, %arg2: memref<64x1xf32, #tpu.memory_space<vmem>>, %arg3: memref<1x128xf32, #tpu.memory_space<vmem>>, %arg4: memref<1x128xf32, #tpu.memory_space<vmem>>, %arg5: memref<64x128xf32, #tpu.memory_space<vmem>>) attributes {dimension_semantics = [#tpu.dimension_semantics<parallel>, #tpu.dimension_semantics<parallel>], iteration_bounds = array<i64: 1, 1>, scalar_prefetch = 0 : i64, scratch_operands = 0 : i64, tpu.core_type = #tpu.core_type<tc>, window_params = [{transform_indices = @transform_0, window_bounds = array<i64: 64, 1>}, {transform_indices = @transform_1, window_bounds = array<i64: 1, 128>}, {transform_indices = @transform_2, window_bounds = array<i64: 1, 128>}, {transform_indices = @transform_3, window_bounds = array<i64: 64, 128>}]} {
    %c0 = arith.constant 0 : index
    %c0_0 = arith.constant 0 : index
    %0 = vector.load %arg2[%c0, %c0_0] : memref<64x1xf32, #tpu.memory_space<vmem>>, vector<64x1xf32>
    %c0_1 = arith.constant 0 : index
    %c0_2 = arith.constant 0 : index
    %1 = vector.load %arg3[%c0_1, %c0_2] : memref<1x128xf32, #tpu.memory_space<vmem>>, vector<1x128xf32>
    %c0_3 = arith.constant 0 : index
    %c0_4 = arith.constant 0 : index
    %2 = vector.load %arg4[%c0_3, %c0_4] : memref<1x128xf32, #tpu.memory_space<vmem>>, vector<1x128xf32>
    %3 = vector.broadcast %0 : vector<64x1xf32> to vector<64x128xf32>
    %4 = vector.broadcast %1 : vector<1x128xf32> to vector<64x128xf32>
    %5 = arith.mulf %3, %4 : vector<64x128xf32>
    %6 = vector.broadcast %2 : vector<1x128xf32> to vector<64x128xf32>
    %7 = arith.addf %5, %6 : vector<64x128xf32>
    %c0_5 = arith.constant 0 : index
    %c0_6 = arith.constant 0 : index
    %8 = vector.load %arg5[%c0_5, %c0_6] : memref<64x128xf32, #tpu.memory_space<vmem>>, vector<64x128xf32>
    tpu.vector_store %arg5[%c0_5, %c0_6], %7 {strides = array<i32>} : memref<64x128xf32, #tpu.memory_space<vmem>>, vector<64x128xf32>,
    return
  }
  func.func @transform_0(%arg0: i32, %arg1: i32) -> (i32, i32) {
    %c0_i32 = arith.constant 0 : i32
    %c0_i32_0 = arith.constant 0 : i32
    return %arg0, %c0_i32 : i32, i32
  }
  func.func @transform_1(%arg0: i32, %arg1: i32) -> (i32, i32) {
    %c0_i32 = arith.constant 0 : i32
    %c0_i32_0 = arith.constant 0 : i32
    return %c0_i32, %arg1 : i32, i32
  }
  func.func @transform_2(%arg0: i32, %arg1: i32) -> (i32, i32) {
    %c0_i32 = arith.constant 0 : i32
    %c0_i32_0 = arith.constant 0 : i32
    return %c0_i32, %arg1 : i32, i32
  }
  func.func @transform_3(%arg0: i32, %arg1: i32) -> (i32, i32) {
    %c0_i32 = arith.constant 0 : i32
    return %arg0, %arg1 : i32, i32
  }
}

</mosaic_0001>

<bundles_post_ra>
// kernel: tpu_custom_call.1
= control target key start
LH: loop header
LB: loop body
LE: loop exit
PB: predicated region body
PF: predicated region fallthrough
CT: control target
= control target key end

     0   :  { %v149_v2 = vmov 0   ;;  %s215_s0 = inlined_call_operand.vmem [shape: f32[64,1], index: 0, kind: input, shape index: {}]   ;;  %s216_s1 = inlined_call_operand.vmem [shape: f32[1,128], index: 1, kind: input, shape index: {}]   ;;  %s217_s2 = inlined_call_operand.vmem [shape: f32[1,128], index: 2, kind: input, shape index: {}]   ;;  %s218_s3 = inlined_call_operand.hbm [shape: f32[64,128], index: 3, kind: output, shape index: {}]  }
   0x1   :  { %v17_v0 = vld [vmem:[%s215_s0 + $0x10] sm:$0xff]  ;;  %v15_v1 = vld [vmem:[%s215_s0] sm:$0xff]  ;;  %124 = vset.pattern.permute.xlu1 %v149_v2  ;;  %123 = vset.pattern.permute.xlu0 %v149_v2  ;;  %v18_v3 = vld [vmem:[%s215_s0 + $0x18] sm:$0xff] }
   0x2   :  { %37 = vperm.xlu1 %124, %v17_v0   ;;  %27 = vperm.xlu0 %123, %v15_v1   ;;  %v16_v4 = vld [vmem:[%s215_s0 + $0x8] sm:$0xff] }
   0x3   :  { %8 = vsyncpa [#allocation3], 0  ;;  %v20_v5 = vld [vmem:[%s215_s0 + $0x28] sm:$0xff]  ;;  %v19_v6 = vld [vmem:[%s215_s0 + $0x20] sm:$0xff] }
   0x4   :  { %v22_v7 = vld [vmem:[%s215_s0 + $0x38] sm:$0xff]  ;;  %v21_v8 = vld [vmem:[%s215_s0 + $0x30] sm:$0xff]  ;;  %v117_v9 = vld [vmem:[%s216_s1] ss:$0 sm:$0xff]  ;;  %s150_s0 = smov [#allocation2]  }
   0x5   :  { %v118_v10 = vld [vmem:[%s217_s2] ss:$0 sm:$0xff]  ;;  %s106_s1 = sshll.u32 %s150_s0, 4  ;;  %s107_s1 = int_to_ptr.vmem [resolvable:$true] %s106_s1 }
   0x6   :  { %42 = vperm.xlu1 %124, %v18_v3   ;;  %32 = vperm.xlu0 %123, %v16_v4   ;;  %s125_s2 = scalar_lea.vmem %s107_s1, 1024  ;;  %p130_p1 = scmp.lt.s32.totalorder %s107_s1, %s107_s1 }
   0x7   :  { %p126_p0 = scmp.ne.s32.totalorder %s107_s1, %s125_s2  ;;  %p131_p2 = scmp.lt.s32.totalorder %s125_s2, %s125_s2 }
   0x9   :  { %p132_p3 = por %p131_p2, %p130_p1 }
   0xa   :  { %52 = vperm.xlu1 %124, %v20_v5   ;;  %47 = vperm.xlu0 %123, %v19_v6  }
   0xb   :  { %p133_p4 = pnand %p132_p3, %p126_p0 }
   0xe   :  { %62 = vperm.xlu1 %124, %v22_v7   ;;  %57 = vperm.xlu0 %123, %v21_v8  }
  0x81   :  { %v38_v11 = vpop.permute.xlu1 %37  ;;  %v28_v12 = vpop.permute.xlu0 %27 }
  0x82   :  { %v73_v13 = vmul.f32 %v117_v9, %v38_v11  ;;  %v71_v14 = vmul.f32 %v117_v9, %v28_v12 }
  0x84   :  { %v87_v15 = vadd.f32 %v118_v10, %v73_v13  ;;  %v85_v16 = vadd.f32 %v118_v10, %v71_v14 }
  0x85   :  { %v43_v17 = vpop.permute.xlu1 %42  ;;  %v33_v18 = vpop.permute.xlu0 %32 }
  0x86   :  { %95 = vst [vmem:[#allocation2 + $0x10] sm:$0xff] %v87_v15  ;;  %93 = vst [vmem:[#allocation2] sm:$0xff] %v85_v16  ;;  %v74_v19 = vmul.f32 %v117_v9, %v43_v17  ;;  %v72_v20 = vmul.f32 %v117_v9, %v33_v18 }
  0x88   :  { %v88_v21 = vadd.f32 %v118_v10, %v74_v19  ;;  %v86_v22 = vadd.f32 %v118_v10, %v72_v20 }
  0x89   :  { %v53_v23 = vpop.permute.xlu1 %52  ;;  %v48_v24 = vpop.permute.xlu0 %47 }
  0x8a   :  { %96 = vst [vmem:[#allocation2 + $0x18] sm:$0xff] %v88_v21  ;;  %94 = vst [vmem:[#allocation2 + $0x8] sm:$0xff] %v86_v22  ;;  %v76_v25 = vmul.f32 %v117_v9, %v53_v23  ;;  %v75_v26 = vmul.f32 %v117_v9, %v48_v24 }
  0x8c   :  { %v90_v27 = vadd.f32 %v118_v10, %v76_v25  ;;  %v89_v28 = vadd.f32 %v118_v10, %v75_v26 }
  0x8d   :  { %v63_v29 = vpop.permute.xlu1 %62  ;;  %v58_v30 = vpop.permute.xlu0 %57 }
  0x8e   :  { %98 = vst [vmem:[#allocation2 + $0x28] sm:$0xff] %v90_v27  ;;  %97 = vst [vmem:[#allocation2 + $0x20] sm:$0xff] %v89_v28  ;;  %v78_v31 = vmul.f32 %v117_v9, %v63_v29  ;;  %v77_v32 = vmul.f32 %v117_v9, %v58_v30 }
  0x90   :  { %v92_v33 = vadd.f32 %v118_v10, %v78_v31  ;;  %v91_v34 = vadd.f32 %v118_v10, %v77_v32 }
  0x92   :  { %100 = vst [vmem:[#allocation2 + $0x38] sm:$0xff] %v92_v33  ;;  %99 = vst [vmem:[#allocation2 + $0x30] sm:$0xff] %v91_v34 }
  0x93   :  { %136 = shalt.err (!%p133_p4)
}
  0x94   :  { %s137_s7 = scalar_lea.hbm %s218_s3, 1024 }
  0x95   :  { %p138_p5 = scmp.ne.s32.totalorder %s218_s3, %s137_s7  ;;  %p141_p6 = scmp.lt.u32.totalorder %s137_s7, %s218_s3 }
  0x97   :  { %p143_p7 = pnand %p141_p6, %p138_p5 }
  0x99   :  { %146 = shalt.err (!%p143_p7)
}
  0x9a   :  { %s151_s12 = smov 128   ;;  %s152_s13 = smov 8  }
  0x9b   :  { %112 = dma.vmem_to_hbm [thread:$0]  %s107_s1, 1024, %s218_s3, [#allocation3], %s151_s12, %s151_s12, %s152_s13  }
  0x9c   :  { %147 = dma.done.wait [#allocation3], 1024  }
  0x9d   :  { %148 = vsyncadd [#allocation3], 4294966272 }
  0x9e   :  { %116 = vsyncpa [#allocation3], 1 }

</bundles_post_ra>
